<compile_context>
chip_gen: v7x
topology: tpu7x:2x2x1
jax: 0.10.0
libtpu: 0.0.40
codegen_flags: <defaults>
</compile_context>

<pallas_src>
import jax
import jax.numpy as jnp
from jax.experimental import pallas as pl
from jax.experimental.pallas import tpu as pltpu


def _dynconv_kernel(x_ref, a_ref, o_ref):
    # x_ref: (C, V, Lb)   a_ref: (V, W, Lb)   o_ref: (C, W, Lb)
    x = x_ref[...].astype(jnp.float32)
    a = a_ref[...].astype(jnp.float32)
    C, V, Lb = x.shape
    W = a.shape[1]

    acc = jnp.zeros((C, W, Lb), jnp.float32)
    # V is static and small: unrolled vector FMAs with L mapped to lanes.
    for v in range(V):
        acc = acc + x[:, v, :][:, None, :] * a[v][None, :, :]
    o_ref[...] = acc.astype(o_ref.dtype)


def _pick_lb(L: int) -> int:
    # Largest lane-friendly timestep block that tiles L exactly.
    for lb in (512, 256, 128):
        if L % lb == 0:
            return lb
    return L  # small / irregular L: single block == full extent (legal spec)


def dynconv(x, adj):
    """x: (N, C, V, L), adj: (N, V, W, L) -> (N, C, W, L) (torch layout)."""
    N, C, V, L = x.shape
    Na, Va, W, La = adj.shape
    assert (N, V, L) == (Na, Va, La), "shape mismatch between x and adj"

    Lb = _pick_lb(L)
    grid = (N, L // Lb)

    # VMEM budget: double-buffered x/adj/out blocks + accumulator. Only raise
    # the scoped limit when the default 32 MiB would be tight (v7x: 64 MiB
    # physical).
    blk_bytes = 4 * Lb * (C * V + V * W + C * W)
    vmem_need = 3 * blk_bytes
    vmem_limit = None
    if vmem_need > 32 * 1024 * 1024:
        vmem_limit = min(int(vmem_need * 2), 100 * 1024 * 1024)

    return pl.pallas_call(
        _dynconv_kernel,
        out_shape=jax.ShapeDtypeStruct((N, C, W, L), x.dtype),
        grid=grid,
        in_specs=[
            pl.BlockSpec((pl.Squeezed(), C, V, Lb),
                         lambda n, lb: (n, 0, 0, lb)),
            pl.BlockSpec((pl.Squeezed(), V, W, Lb),
                         lambda n, lb: (n, 0, 0, lb)),
        ],
        out_specs=pl.BlockSpec((pl.Squeezed(), C, W, Lb),
                               lambda n, lb: (n, 0, 0, lb)),
        compiler_params=pltpu.CompilerParams(
            dimension_semantics=("parallel", "parallel"),
            vmem_limit_bytes=vmem_limit,
        ),
    )(x, adj)


if __name__ == "__main__":
    key = jax.random.PRNGKey(0)
    k1, k2 = jax.random.split(key)

    # Small shapes: batch=2, channels=4, nodes V=W=16, seq L=8.
    N, C, V, W, L = 2, 4, 16, 16, 8
    x = jax.random.normal(k1, (N, C, V, L), dtype=jnp.float32)
    adj = jax.random.normal(k2, (N, V, W, L), dtype=jnp.float32)

    out = jax.block_until_ready(dynconv(x, adj))
    ref = jnp.einsum("ncvl,nvwl->ncwl", x, adj)
    assert out.shape == (N, C, W, L)
    assert jnp.allclose(out, ref, atol=1e-5, rtol=1e-5), "mismatch vs einsum ref"

    # Also exercise the lane-dense / L-blocked path (L multiple of 128).
    L2 = 256
    x2 = jax.random.normal(k1, (N, C, V, L2), dtype=jnp.float32)
    adj2 = jax.random.normal(k2, (N, V, W, L2), dtype=jnp.float32)
    out2 = jax.block_until_ready(dynconv(x2, adj2))
    ref2 = jnp.einsum("ncvl,nvwl->ncwl", x2, adj2)
    assert jnp.allclose(out2, ref2, atol=1e-4, rtol=1e-4), "mismatch (blocked L)"

    print("KERNEL_OK")
</pallas_src>

<mosaic_0001>
module attributes {stable_mosaic.version = 11 : i64} {
  func.func @_dynconv_kernel(%arg0: i32, %arg1: i32, %arg2: memref<1x4x16x8xf32, #tpu.memory_space<vmem>>, %arg3: memref<1x16x16x8xf32, #tpu.memory_space<vmem>>, %arg4: memref<1x4x16x8xf32, #tpu.memory_space<vmem>>) attributes {dimension_semantics = [#tpu.dimension_semantics<parallel>, #tpu.dimension_semantics<parallel>], iteration_bounds = array<i64: 2, 1>, scalar_prefetch = 0 : i64, scratch_operands = 0 : i64, tpu.core_type = #tpu.core_type<tc>, window_params = [{transform_indices = @transform_0, window_bounds = array<i64: 1, 4, 16, 8>}, {transform_indices = @transform_1, window_bounds = array<i64: 1, 16, 16, 8>}, {transform_indices = @transform_2, window_bounds = array<i64: 1, 4, 16, 8>}]} {
    %c0 = arith.constant 0 : index
    %c0_0 = arith.constant 0 : index
    %c0_1 = arith.constant 0 : index
    %c0_2 = arith.constant 0 : index
    %0 = vector.load %arg2[%c0, %c0_0, %c0_1, %c0_2] : memref<1x4x16x8xf32, #tpu.memory_space<vmem>>, vector<1x4x16x8xf32>
    %1 = vector.shape_cast %0 : vector<1x4x16x8xf32> to vector<4x16x8xf32>
    %c0_3 = arith.constant 0 : index
    %c0_4 = arith.constant 0 : index
    %c0_5 = arith.constant 0 : index
    %c0_6 = arith.constant 0 : index
    %2 = vector.load %arg3[%c0_3, %c0_4, %c0_5, %c0_6] : memref<1x16x16x8xf32, #tpu.memory_space<vmem>>, vector<1x16x16x8xf32>
    %3 = vector.shape_cast %2 : vector<1x16x16x8xf32> to vector<16x16x8xf32>
    %cst = arith.constant 0.000000e+00 : f32
    %4 = vector.broadcast %cst : f32 to vector<4x16x8xf32>
    %5 = vector.extract_strided_slice %1 {offsets = [0, 0, 0], sizes = [4, 1, 8], strides = [1, 1, 1]} : vector<4x16x8xf32> to vector<4x1x8xf32>
    %6 = vector.shape_cast %5 : vector<4x1x8xf32> to vector<4x8xf32>
    %7 = vector.shape_cast %6 : vector<4x8xf32> to vector<4x1x8xf32>
    %8 = vector.extract_strided_slice %3 {offsets = [0, 0, 0], sizes = [1, 16, 8], strides = [1, 1, 1]} : vector<16x16x8xf32> to vector<1x16x8xf32>
    %9 = vector.shape_cast %8 : vector<1x16x8xf32> to vector<16x8xf32>
    %10 = vector.shape_cast %9 : vector<16x8xf32> to vector<1x16x8xf32>
    %11 = vector.broadcast %7 : vector<4x1x8xf32> to vector<4x16x8xf32>
    %12 = vector.broadcast %10 : vector<1x16x8xf32> to vector<4x16x8xf32>
    %13 = arith.mulf %11, %12 : vector<4x16x8xf32>
    %14 = arith.addf %4, %13 : vector<4x16x8xf32>
    %15 = vector.extract_strided_slice %1 {offsets = [0, 1, 0], sizes = [4, 1, 8], strides = [1, 1, 1]} : vector<4x16x8xf32> to vector<4x1x8xf32>
    %16 = vector.shape_cast %15 : vector<4x1x8xf32> to vector<4x8xf32>
    %17 = vector.shape_cast %16 : vector<4x8xf32> to vector<4x1x8xf32>
    %18 = vector.extract_strided_slice %3 {offsets = [1, 0, 0], sizes = [1, 16, 8], strides = [1, 1, 1]} : vector<16x16x8xf32> to vector<1x16x8xf32>
    %19 = vector.shape_cast %18 : vector<1x16x8xf32> to vector<16x8xf32>
    %20 = vector.shape_cast %19 : vector<16x8xf32> to vector<1x16x8xf32>
    %21 = vector.broadcast %17 : vector<4x1x8xf32> to vector<4x16x8xf32>
    %22 = vector.broadcast %20 : vector<1x16x8xf32> to vector<4x16x8xf32>
    %23 = arith.mulf %21, %22 : vector<4x16x8xf32>
    %24 = arith.addf %14, %23 : vector<4x16x8xf32>
    %25 = vector.extract_strided_slice %1 {offsets = [0, 2, 0], sizes = [4, 1, 8], strides = [1, 1, 1]} : vector<4x16x8xf32> to vector<4x1x8xf32>
    %26 = vector.shape_cast %25 : vector<4x1x8xf32> to vector<4x8xf32>
    %27 = vector.shape_cast %26 : vector<4x8xf32> to vector<4x1x8xf32>
    %28 = vector.extract_strided_slice %3 {offsets = [2, 0, 0], sizes = [1, 16, 8], strides = [1, 1, 1]} : vector<16x16x8xf32> to vector<1x16x8xf32>
    %29 = vector.shape_cast %28 : vector<1x16x8xf32> to vector<16x8xf32>
    %30 = vector.shape_cast %29 : vector<16x8xf32> to vector<1x16x8xf32>
    %31 = vector.broadcast %27 : vector<4x1x8xf32> to vector<4x16x8xf32>
    %32 = vector.broadcast %30 : vector<1x16x8xf32> to vector<4x16x8xf32>
    %33 = arith.mulf %31, %32 : vector<4x16x8xf32>
    %34 = arith.addf %24, %33 : vector<4x16x8xf32>
    %35 = vector.extract_strided_slice %1 {offsets = [0, 3, 0], sizes = [4, 1, 8], strides = [1, 1, 1]} : vector<4x16x8xf32> to vector<4x1x8xf32>
    %36 = vector.shape_cast %35 : vector<4x1x8xf32> to vector<4x8xf32>
    %37 = vector.shape_cast %36 : vector<4x8xf32> to vector<4x1x8xf32>
    %38 = vector.extract_strided_slice %3 {offsets = [3, 0, 0], sizes = [1, 16, 8], strides = [1, 1, 1]} : vector<16x16x8xf32> to vector<1x16x8xf32>
    %39 = vector.shape_cast %38 : vector<1x16x8xf32> to vector<16x8xf32>
    %40 = vector.shape_cast %39 : vector<16x8xf32> to vector<1x16x8xf32>
    %41 = vector.broadcast %37 : vector<4x1x8xf32> to vector<4x16x8xf32>
    %42 = vector.broadcast %40 : vector<1x16x8xf32> to vector<4x16x8xf32>
    %43 = arith.mulf %41, %42 : vector<4x16x8xf32>
    %44 = arith.addf %34, %43 : vector<4x16x8xf32>
    %45 = vector.extract_strided_slice %1 {offsets = [0, 4, 0], sizes = [4, 1, 8], strides = [1, 1, 1]} : vector<4x16x8xf32> to vector<4x1x8xf32>
    %46 = vector.shape_cast %45 : vector<4x1x8xf32> to vector<4x8xf32>
    %47 = vector.shape_cast %46 : vector<4x8xf32> to vector<4x1x8xf32>
    %48 = vector.extract_strided_slice %3 {offsets = [4, 0, 0], sizes = [1, 16, 8], strides = [1, 1, 1]} : vector<16x16x8xf32> to vector<1x16x8xf32>
    %49 = vector.shape_cast %48 : vector<1x16x8xf32> to vector<16x8xf32>
    %50 = vector.shape_cast %49 : vector<16x8xf32> to vector<1x16x8xf32>
    %51 = vector.broadcast %47 : vector<4x1x8xf32> to vector<4x16x8xf32>
    %52 = vector.broadcast %50 : vector<1x16x8xf32> to vector<4x16x8xf32>
    %53 = arith.mulf %51, %52 : vector<4x16x8xf32>
    %54 = arith.addf %44, %53 : vector<4x16x8xf32>
    %55 = vector.extract_strided_slice %1 {offsets = [0, 5, 0], sizes = [4, 1, 8], strides = [1, 1, 1]} : vector<4x16x8xf32> to vector<4x1x8xf32>
    %56 = vector.shape_cast %55 : vector<4x1x8xf32> to vector<4x8xf32>
    %57 = vector.shape_cast %56 : vector<4x8xf32> to vector<4x1x8xf32>
    %58 = vector.extract_strided_slice %3 {offsets = [5, 0, 0], sizes = [1, 16, 8], strides = [1, 1, 1]} : vector<16x16x8xf32> to vector<1x16x8xf32>
    %59 = vector.shape_cast %58 : vector<1x16x8xf32> to vector<16x8xf32>
    %60 = vector.shape_cast %59 : vector<16x8xf32> to vector<1x16x8xf32>
    %61 = vector.broadcast %57 : vector<4x1x8xf32> to vector<4x16x8xf32>
    %62 = vector.broadcast %60 : vector<1x16x8xf32> to vector<4x16x8xf32>
    %63 = arith.mulf %61, %62 : vector<4x16x8xf32>
    %64 = arith.addf %54, %63 : vector<4x16x8xf32>
    %65 = vector.extract_strided_slice %1 {offsets = [0, 6, 0], sizes = [4, 1, 8], strides = [1, 1, 1]} : vector<4x16x8xf32> to vector<4x1x8xf32>
    %66 = vector.shape_cast %65 : vector<4x1x8xf32> to vector<4x8xf32>
    %67 = vector.shape_cast %66 : vector<4x8xf32> to vector<4x1x8xf32>
    %68 = vector.extract_strided_slice %3 {offsets = [6, 0, 0], sizes = [1, 16, 8], strides = [1, 1, 1]} : vector<16x16x8xf32> to vector<1x16x8xf32>
    %69 = vector.shape_cast %68 : vector<1x16x8xf32> to vector<16x8xf32>
    %70 = vector.shape_cast %69 : vector<16x8xf32> to vector<1x16x8xf32>
    %71 = vector.broadcast %67 : vector<4x1x8xf32> to vector<4x16x8xf32>
    %72 = vector.broadcast %70 : vector<1x16x8xf32> to vector<4x16x8xf32>
    %73 = arith.mulf %71, %72 : vector<4x16x8xf32>
    %74 = arith.addf %64, %73 : vector<4x16x8xf32>
    %75 = vector.extract_strided_slice %1 {offsets = [0, 7, 0], sizes = [4, 1, 8], strides = [1, 1, 1]} : vector<4x16x8xf32> to vector<4x1x8xf32>
    %76 = vector.shape_cast %75 : vector<4x1x8xf32> to vector<4x8xf32>
    %77 = vector.shape_cast %76 : vector<4x8xf32> to vector<4x1x8xf32>
    %78 = vector.extract_strided_slice %3 {offsets = [7, 0, 0], sizes = [1, 16, 8], strides = [1, 1, 1]} : vector<16x16x8xf32> to vector<1x16x8xf32>
    %79 = vector.shape_cast %78 : vector<1x16x8xf32> to vector<16x8xf32>
    %80 = vector.shape_cast %79 : vector<16x8xf32> to vector<1x16x8xf32>
    %81 = vector.broadcast %77 : vector<4x1x8xf32> to vector<4x16x8xf32>
    %82 = vector.broadcast %80 : vector<1x16x8xf32> to vector<4x16x8xf32>
    %83 = arith.mulf %81, %82 : vector<4x16x8xf32>
    %84 = arith.addf %74, %83 : vector<4x16x8xf32>
    %85 = vector.extract_strided_slice %1 {offsets = [0, 8, 0], sizes = [4, 1, 8], strides = [1, 1, 1]} : vector<4x16x8xf32> to vector<4x1x8xf32>
    %86 = vector.shape_cast %85 : vector<4x1x8xf32> to vector<4x8xf32>
    %87 = vector.shape_cast %86 : vector<4x8xf32> to vector<4x1x8xf32>
    %88 = vector.extract_strided_slice %3 {offsets = [8, 0, 0], sizes = [1, 16, 8], strides = [1, 1, 1]} : vector<16x16x8xf32> to vector<1x16x8xf32>
    %89 = vector.shape_cast %88 : vector<1x16x8xf32> to vector<16x8xf32>
    %90 = vector.shape_cast %89 : vector<16x8xf32> to vector<1x16x8xf32>
    %91 = vector.broadcast %87 : vector<4x1x8xf32> to vector<4x16x8xf32>
    %92 = vector.broadcast %90 : vector<1x16x8xf32> to vector<4x16x8xf32>
    %93 = arith.mulf %91, %92 : vector<4x16x8xf32>
    %94 = arith.addf %84, %93 : vector<4x16x8xf32>
    %95 = vector.extract_strided_slice %1 {offsets = [0, 9, 0], sizes = [4, 1, 8], strides = [1, 1, 1]} : vector<4x16x8xf32> to vector<4x1x8xf32>
    %96 = vector.shape_cast %95 : vector<4x1x8xf32> to vector<4x8xf32>
    %97 = vector.shape_cast %96 : vector<4x8xf32> to vector<4x1x8xf32>
    %98 = vector.extract_strided_slice %3 {offsets = [9, 0, 0], sizes = [1, 16, 8], strides = [1, 1, 1]} : vector<16x16x8xf32> to vector<1x16x8xf32>
    %99 = vector.shape_cast %98 : vector<1x16x8xf32> to vector<16x8xf32>
    %100 = vector.shape_cast %99 : vector<16x8xf32> to vector<1x16x8xf32>
    %101 = vector.broadcast %97 : vector<4x1x8xf32> to vector<4x16x8xf32>
    %102 = vector.broadcast %100 : vector<1x16x8xf32> to vector<4x16x8xf32>
    %103 = arith.mulf %101, %102 : vector<4x16x8xf32>
    %104 = arith.addf %94, %103 : vector<4x16x8xf32>
    %105 = vector.extract_strided_slice %1 {offsets = [0, 10, 0], sizes = [4, 1, 8], strides = [1, 1, 1]} : vector<4x16x8xf32> to vector<4x1x8xf32>
    %106 = vector.shape_cast %105 : vector<4x1x8xf32> to vector<4x8xf32>
    %107 = vector.shape_cast %106 : vector<4x8xf32> to vector<4x1x8xf32>
    %108 = vector.extract_strided_slice %3 {offsets = [10, 0, 0], sizes = [1, 16, 8], strides = [1, 1, 1]} : vector<16x16x8xf32> to vector<1x16x8xf32>
    %109 = vector.shape_cast %108 : vector<1x16x8xf32> to vector<16x8xf32>
    %110 = vector.shape_cast %109 : vector<16x8xf32> to vector<1x16x8xf32>
    %111 = vector.broadcast %107 : vector<4x1x8xf32> to vector<4x16x8xf32>
    %112 = vector.broadcast %110 : vector<1x16x8xf32> to vector<4x16x8xf32>
    %113 = arith.mulf %111, %112 : vector<4x16x8xf32>
    %114 = arith.addf %104, %113 : vector<4x16x8xf32>
    %115 = vector.extract_strided_slice %1 {offsets = [0, 11, 0], sizes = [4, 1, 8], strides = [1, 1, 1]} : vector<4x16x8xf32> to vector<4x1x8xf32>
    %116 = vector.shape_cast %115 : vector<4x1x8xf32> to vector<4x8xf32>
    %117 = vector.shape_cast %116 : vector<4x8xf32> to vector<4x1x8xf32>
    %118 = vector.extract_strided_slice %3 {offsets = [11, 0, 0], sizes = [1, 16, 8], strides = [1, 1, 1]} : vector<16x16x8xf32> to vector<1x16x8xf32>
    %119 = vector.shape_cast %118 : vector<1x16x8xf32> to vector<16x8xf32>
    %120 = vector.shape_cast %119 : vector<16x8xf32> to vector<1x16x8xf32>
    %121 = vector.broadcast %117 : vector<4x1x8xf32> to vector<4x16x8xf32>
    %122 = vector.broadcast %120 : vector<1x16x8xf32> to vector<4x16x8xf32>
    %123 = arith.mulf %121, %122 : vector<4x16x8xf32>
    %124 = arith.addf %114, %123 : vector<4x16x8xf32>
    %125 = vector.extract_strided_slice %1 {offsets = [0, 12, 0], sizes = [4, 1, 8], strides = [1, 1, 1]} : vector<4x16x8xf32> to vector<4x1x8xf32>
    %126 = vector.shape_cast %125 : vector<4x1x8xf32> to vector<4x8xf32>
    %127 = vector.shape_cast %126 : vector<4x8xf32> to vector<4x1x8xf32>
    %128 = vector.extract_strided_slice %3 {offsets = [12, 0, 0], sizes = [1, 16, 8], strides = [1, 1, 1]} : vector<16x16x8xf32> to vector<1x16x8xf32>
    %129 = vector.shape_cast %128 : vector<1x16x8xf32> to vector<16x8xf32>
    %130 = vector.shape_cast %129 : vector<16x8xf32> to vector<1x16x8xf32>
    %131 = vector.broadcast %127 : vector<4x1x8xf32> to vector<4x16x8xf32>
    %132 = vector.broadcast %130 : vector<1x16x8xf32> to vector<4x16x8xf32>
    %133 = arith.mulf %131, %132 : vector<4x16x8xf32>
    %134 = arith.addf %124, %133 : vector<4x16x8xf32>
    %135 = vector.extract_strided_slice %1 {offsets = [0, 13, 0], sizes = [4, 1, 8], strides = [1, 1, 1]} : vector<4x16x8xf32> to vector<4x1x8xf32>
    %136 = vector.shape_cast %135 : vector<4x1x8xf32> to vector<4x8xf32>
    %137 = vector.shape_cast %136 : vector<4x8xf32> to vector<4x1x8xf32>
    %138 = vector.extract_strided_slice %3 {offsets = [13, 0, 0], sizes = [1, 16, 8], strides = [1, 1, 1]} : vector<16x16x8xf32> to vector<1x16x8xf32>
    %139 = vector.shape_cast %138 : vector<1x16x8xf32> to vector<16x8xf32>
    %140 = vector.shape_cast %139 : vector<16x8xf32> to vector<1x16x8xf32>
    %141 = vector.broadcast %137 : vector<4x1x8xf32> to vector<4x16x8xf32>
    %142 = vector.broadcast %140 : vector<1x16x8xf32> to vector<4x16x8xf32>
    %143 = arith.mulf %141, %142 : vector<4x16x8xf32>
    %144 = arith.addf %134, %143 : vector<4x16x8xf32>
    %145 = vector.extract_strided_slice %1 {offsets = [0, 14, 0], sizes = [4, 1, 8], strides = [1, 1, 1]} : vector<4x16x8xf32> to vector<4x1x8xf32>
    %146 = vector.shape_cast %145 : vector<4x1x8xf32> to vector<4x8xf32>
    %147 = vector.shape_cast %146 : vector<4x8xf32> to vector<4x1x8xf32>
    %148 = vector.extract_strided_slice %3 {offsets = [14, 0, 0], sizes = [1, 16, 8], strides = [1, 1, 1]} : vector<16x16x8xf32> to vector<1x16x8xf32>
    %149 = vector.shape_cast %148 : vector<1x16x8xf32> to vector<16x8xf32>
    %150 = vector.shape_cast %149 : vector<16x8xf32> to vector<1x16x8xf32>
    %151 = vector.broadcast %147 : vector<4x1x8xf32> to vector<4x16x8xf32>
    %152 = vector.broadcast %150 : vector<1x16x8xf32> to vector<4x16x8xf32>
    %153 = arith.mulf %151, %152 : vector<4x16x8xf32>
    %154 = arith.addf %144, %153 : vector<4x16x8xf32>
    %155 = vector.extract_strided_slice %1 {offsets = [0, 15, 0], sizes = [4, 1, 8], strides = [1, 1, 1]} : vector<4x16x8xf32> to vector<4x1x8xf32>
    %156 = vector.shape_cast %155 : vector<4x1x8xf32> to vector<4x8xf32>
    %157 = vector.shape_cast %156 : vector<4x8xf32> to vector<4x1x8xf32>
    %158 = vector.extract_strided_slice %3 {offsets = [15, 0, 0], sizes = [1, 16, 8], strides = [1, 1, 1]} : vector<16x16x8xf32> to vector<1x16x8xf32>
    %159 = vector.shape_cast %158 : vector<1x16x8xf32> to vector<16x8xf32>
    %160 = vector.shape_cast %159 : vector<16x8xf32> to vector<1x16x8xf32>
    %161 = vector.broadcast %157 : vector<4x1x8xf32> to vector<4x16x8xf32>
    %162 = vector.broadcast %160 : vector<1x16x8xf32> to vector<4x16x8xf32>
    %163 = arith.mulf %161, %162 : vector<4x16x8xf32>
    %164 = arith.addf %154, %163 : vector<4x16x8xf32>
    %c0_7 = arith.constant 0 : index
    %c0_8 = arith.constant 0 : index
    %c0_9 = arith.constant 0 : index
    %c0_10 = arith.constant 0 : index
    %165 = vector.load %arg4[%c0_7, %c0_8, %c0_9, %c0_10] : memref<1x4x16x8xf32, #tpu.memory_space<vmem>>, vector<1x4x16x8xf32>
    %166 = vector.shape_cast %165 : vector<1x4x16x8xf32> to vector<4x16x8xf32>
    %167 = vector.shape_cast %164 : vector<4x16x8xf32> to vector<1x4x16x8xf32>
    tpu.vector_store %arg4[%c0_7, %c0_8, %c0_9, %c0_10], %167 {strides = array<i32>} : memref<1x4x16x8xf32, #tpu.memory_space<vmem>>, vector<1x4x16x8xf32>,
    return
  }
  func.func @transform_0(%arg0: i32, %arg1: i32) -> (i32, i32, i32, i32) {
    %c0_i32 = arith.constant 0 : i32
    %c0_i32_0 = arith.constant 0 : i32
    %c0_i32_1 = arith.constant 0 : i32
    return %arg0, %c0_i32, %c0_i32_0, %arg1 : i32, i32, i32, i32
  }
  func.func @transform_1(%arg0: i32, %arg1: i32) -> (i32, i32, i32, i32) {
    %c0_i32 = arith.constant 0 : i32
    %c0_i32_0 = arith.constant 0 : i32
    %c0_i32_1 = arith.constant 0 : i32
    return %arg0, %c0_i32, %c0_i32_0, %arg1 : i32, i32, i32, i32
  }
  func.func @transform_2(%arg0: i32, %arg1: i32) -> (i32, i32, i32, i32) {
    %c0_i32 = arith.constant 0 : i32
    %c0_i32_0 = arith.constant 0 : i32
    %c0_i32_1 = arith.constant 0 : i32
    return %arg0, %c0_i32, %c0_i32_0, %arg1 : i32, i32, i32, i32
  }
}

</mosaic_0001>

<bundles_post_ra>
// kernel: tpu_custom_call.1
= control target key start
LH: loop header
LB: loop body
LE: loop exit
PB: predicated region body
PF: predicated region fallthrough
CT: control target
= control target key end

     0   :  { %s947_s9 = smov 0   ;;  %s949_s10 = smov 0   ;;  %s1468_s0 = inlined_call_operand.vmem [shape: f32[2,4,16,8], index: 0, kind: input, shape index: {}]   ;;  %s1469_s1 = inlined_call_operand.vmem [shape: f32[2,16,16,8], index: 1, kind: input, shape index: {}]   ;;  %s1470_s2 = inlined_call_operand.vmem [shape: f32[2,4,16,8], index: 2, kind: output, shape index: {}]  }
   0x1   :  { %s951_s11 = smov 0  }
   0x2 LB: > { %s24_s12 = sadd.s32 1, %s926_s10  ;;  %p872_p0 = scmp.ge.s32.totalorder %s930_s11, 1  ;;  %s930_s11 = sphi %s951_s11, %s12_s11   ;;  %s926_s10 = sphi %s949_s10, %s1603_s10   ;;  %s922_s9 = sphi %s947_s9, %s1602_s9  }
   0x3   : > { %p26_p1 = scmp.ge.s32.totalorder %s24_s12, 2  ;;  %p146_p2 = scmp.lt.s32.totalorder %s930_s11, 3 }
   0x5   : > { %s1605_s12 = smov (%p26_p1, %s24_s12), 0  ;;  %p147_p3 = pnand %p872_p0, %p146_p2 }
   0x7   : > { %150 = sbr.rel (%p147_p3) target bundleno = 118 (0x76), region = 28 }
   0xe   : > { %p182_p4 = scmp.lt.s32.totalorder %s922_s9, 1  ;;  %v246_v0 = vlaneseq  ;;  %vm758_vm0 = vcmask 64512  }
  0x10   : > { %s1607_s9 = smov (!%p182_p4, %s922_s9), 1  ;;  %v247_v1 = vshrl.u32 %v246_v0, 7 }
  0x11   : > { %s881_s13 = sshll.u32 %s1607_s9, 6  ;;  %s882_s14 = sshll.u32 %s1607_s9, 8 }
  0x12   : > { %v969_v2 = vsub.s32 0, %v247_v1  ;;  %v971_v3 = vsub.s32 1, %v247_v1  ;;  %v973_v4 = vsub.s32 2, %v247_v1  ;;  %v975_v5 = vsub.s32 3, %v247_v1  ;;  %s982_s17 = scalar_lea.vmem %s1468_s0, %s881_s13  ;;  %s987_s20 = scalar_lea.vmem %s1469_s1, %s882_s14 }
  0x13   : > { %v989_v6 = vsub.s32 4, %v247_v1  ;;  %v991_v7 = vsub.s32 5, %v247_v1  ;;  %v993_v8 = vsub.s32 6, %v247_v1  ;;  %v206_v9 = vld [vmem:[%s982_s17] sm:$0xff]  ;;  %v1004_v15 = vld [vmem:[%s987_s20 + $0x10] sm:$0xff]  ;;  %v1014_v20 = vsub.s32 7, %v247_v1  ;;  %s1248_s23 = scalar_lea.vmem %s1470_s2, %s881_s13 }
  0x14   : > { %v997_v10 = vld [vmem:[%s987_s20] sm:$0xff]  ;;  %v249_v11 = vrot.slane %v206_v9, %v969_v2  ;;  %v281_v12 = vrot.slane %v206_v9, %v971_v3  ;;  %v313_v13 = vrot.slane %v206_v9, %v973_v4  ;;  %v345_v14 = vrot.slane %v206_v9, %v975_v5  ;;  %1525 = vst [vmem:[#allocation3_spill] sm:$0xff] %v1004_v15  ;;  %v1010_v17 = vld [vmem:[%s987_s20 + $0x30] sm:$0xff]  ;;  %v207_v21 = vld [vmem:[%s982_s17 + $0x8] sm:$0xff] }
  0x15   : > { %1524 = vst [vmem:[#allocation2_spill] sm:$0xff] %v997_v10  ;;  %v1007_v16 = vld [vmem:[%s987_s20 + $0x20] sm:$0xff]  ;;  %v377_v18 = vrot.slane %v206_v9, %v989_v6  ;;  %v409_v19 = vrot.slane %v206_v9, %v991_v7  ;;  %v441_v26 = vrot.slane %v206_v9, %v993_v8  ;;  %v1025_v27 = vld [vmem:[%s987_s20 + $0x50] sm:$0xff]  ;;  %v473_v34 = vrot.slane %v206_v9, %v1014_v20  ;;  %v1046_v40 = vld [vmem:[%s987_s20 + $0x8] sm:$0xff] }
  0x16   : > { %1526 = vst [vmem:[#allocation4_spill] sm:$0xff] %v1007_v16  ;;  %v1018_v22 = vld [vmem:[%s987_s20 + $0x40] sm:$0xff]  ;;  %v262_v23 = vmul.f32 %v249_v11, %v997_v10  ;;  %v294_v24 = vmul.f32 %v281_v12, %v1004_v15  ;;  %v326_v25 = vmul.f32 %v313_v13, %v1007_v16  ;;  %v358_v30 = vmul.f32 %v345_v14, %v1010_v17  ;;  %v1032_v31 = vld [vmem:[%s987_s20 + $0x70] sm:$0xff]  ;;  %v1049_v41 = vld [vmem:[%s987_s20 + $0x18] sm:$0xff] }
  0x17   : > { %v1028_v28 = vld [vmem:[%s987_s20 + $0x60] sm:$0xff]  ;;  %v390_v33 = vmul.f32 %v377_v18, %v1018_v22  ;;  %v1040_v35 = vrot.slane %v207_v21, %v969_v2  ;;  %v422_v37 = vmul.f32 %v409_v19, %v1025_v27  ;;  %v537_v39 = vrot.slane %v207_v21, %v971_v3  ;;  %1528 = vst [vmem:[#allocation6_spill] sm:$0xff] %v1049_v41  ;;  %v1052_v42 = vld [vmem:[%s987_s20 + $0x28] sm:$0xff]  ;;  %v1055_v43 = vld [vmem:[%s987_s20 + $0x90] sm:$0xff] }
  0x18   : > { %v302_v29 = vadd.f32 %v294_v24, %v262_v23  ;;  %v1035_v32 = vld [vmem:[%s987_s20 + $0x80] sm:$0xff]  ;;  %v454_v38 = vmul.f32 %v441_v26, %v1028_v28  ;;  %1529 = vst [vmem:[#allocation7_spill] sm:$0xff] %v1052_v42  ;;  %1530 = vst [vmem:[#allocation8_spill] sm:$0xff] %v1055_v43  ;;  %v569_v45 = vrot.slane %v207_v21, %v973_v4  ;;  %v1071_v49 = vld [vmem:[%s987_s20 + $0x38] sm:$0xff] }
  0x19   : > { %1527 = vst [vmem:[#allocation5_spill] sm:$0xff] %v1035_v32  ;;  %v1058_v44 = vld [vmem:[%s987_s20 + $0xa0] sm:$0xff]  ;;  %v1062_v46 = vrot.slane %v207_v21, %v975_v5  ;;  %v1065_v47 = vrot.slane %v207_v21, %v989_v6  ;;  %v1068_v48 = vrot.slane %v207_v21, %v991_v7  ;;  %1532 = vst [vmem:[#allocation10_spill] sm:$0xff] %v1071_v49  ;;  %v1074_v50 = vld [vmem:[%s987_s20 + $0xb0] sm:$0xff] }
  0x1a   : > { %v334_v36 = vadd.f32 %v326_v25, %v302_v29  ;;  %1531 = vst [vmem:[#allocation9_spill] sm:$0xff] %v1058_v44  ;;  %1533 = vst [vmem:[#allocation11_spill] sm:$0xff] %v1074_v50  ;;  %v1077_v51 = vld [vmem:[%s987_s20 + $0xc0] sm:$0xff]  ;;  %v1080_v52 = vld [vmem:[%s987_s20 + $0xd0] sm:$0xff]  ;;  %v1083_v54 = vrot.slane %v207_v21, %v993_v8  ;;  %v263_v55 = vmul.f32 %v249_v11, %v1046_v40 }
  0x1b   : > { %1534 = vst [vmem:[#allocation12_spill] sm:$0xff] %v1077_v51  ;;  %1535 = vst [vmem:[#allocation13_spill] sm:$0xff] %v1080_v52  ;;  %v295_v56 = vmul.f32 %v281_v12, %v1049_v41  ;;  %v208_v57 = vld [vmem:[%s982_s17 + $0x10] sm:$0xff]  ;;  %v1089_v58 = vld [vmem:[%s987_s20 + $0xe0] sm:$0xff]  ;;  %v486_v59 = vmul.f32 %v473_v34, %v1032_v31  ;;  %v518_v60 = vmul.f32 %v1040_v35, %v1035_v32 }
  0x1c   : > { %v366_v53 = vadd.f32 %v358_v30, %v334_v36  ;;  %1536 = vst [vmem:[#allocation14_spill] sm:$0xff] %v1089_v58  ;;  %v1095_v61 = vrot.slane %v207_v21, %v1014_v20  ;;  %v1098_v62 = vld [vmem:[%s987_s20 + $0x48] sm:$0xff]  ;;  %v327_v63 = vmul.f32 %v313_v13, %v1052_v42  ;;  %v1102_v0 = vld [vmem:[%s987_s20 + $0xf0] sm:$0xff]  ;;  %v550_v9 = vmul.f32 %v537_v39, %v1055_v43  ;;  %v1106_v11 = vld [vmem:[%s987_s20 + $0x58] sm:$0xff] }
  0x1d   : > { %1537 = vst [vmem:[#allocation15_spill] sm:$0xff] %v1098_v62  ;;  %1538 = vst [vmem:[#allocation16_spill] sm:$0xff] %v1102_v0  ;;  %v1109_v12 = vld [vmem:[%s987_s20 + $0x68] sm:$0xff]  ;;  %v303_v23 = vadd.f32 %v295_v56, %v263_v55  ;;  %v359_v24 = vmul.f32 %v345_v14, %v1071_v49  ;;  %v582_v21 = vmul.f32 %v569_v45, %v1058_v44  ;;  %v1128_v14 = vld [vmem:[%s987_s20 + $0x78] sm:$0xff] }
  0x1e   : > { %v398_v1 = vadd.f32 %v390_v33, %v366_v53  ;;  %1539 = vst [vmem:[#allocation17_spill] sm:$0xff] %v1106_v11  ;;  %1540 = vst [vmem:[#allocation18_spill] sm:$0xff] %v1109_v12  ;;  %v614_v13 = vmul.f32 %v1062_v46, %v1074_v50  ;;  %v1117_v25 = vmul.f32 %v1065_v47, %v1077_v51  ;;  %v1139_v51 = vld [vmem:[%s987_s20 + $0x88] sm:$0xff] }
  0x1f   : > { %v1121_v29 = vmul.f32 %v1068_v48, %v1080_v52  ;;  %v1125_v33 = vmul.f32 %v1083_v54, %v1089_v58  ;;  %1542 = vst [vmem:[#allocation20_spill] sm:$0xff] %v1128_v14  ;;  %v335_v36 = vadd.f32 %v327_v63, %v303_v23  ;;  %v391_v53 = vmul.f32 %v377_v18, %v1098_v62  ;;  %v1142_v58 = vld [vmem:[%s987_s20 + $0x98] sm:$0xff] }
  0x20   : > { %v430_v30 = vadd.f32 %v422_v37, %v398_v1  ;;  %v1133_v55 = vmul.f32 %v1095_v61, %v1102_v0  ;;  %v423_v56 = vmul.f32 %v409_v19, %v1106_v11  ;;  %v455_v52 = vmul.f32 %v441_v26, %v1109_v12  ;;  %1544 = vst [vmem:[#allocation22_spill] sm:$0xff] %v1139_v51  ;;  %v1156_v12 = vld [vmem:[%s987_s20 + $0xb8] sm:$0xff] }
  0x21   : > { %1541 = vst [vmem:[#allocation19_spill] sm:$0xff] %v1125_v33  ;;  %v253_v37 = vrot.slane %v208_v57, %v969_v2  ;;  %1545 = vst [vmem:[#allocation23_spill] sm:$0xff] %v1142_v58  ;;  %v1145_v33 = vld [vmem:[%s987_s20 + $0xa8] sm:$0xff]  ;;  %v367_v18 = vadd.f32 %v359_v24, %v335_v36  ;;  %v285_v63 = vrot.slane %v208_v57, %v971_v3  ;;  %v209_v11 = vld [vmem:[%s982_s17 + $0x18] sm:$0xff] }
  0x22   : > { %1543 = vst [vmem:[#allocation21_spill] sm:$0xff] %v1133_v55  ;;  %v462_v1 = vadd.f32 %v454_v38, %v430_v30  ;;  %1546 = vst [vmem:[#allocation24_spill] sm:$0xff] %v1145_v33  ;;  %v317_v23 = vrot.slane %v208_v57, %v973_v4  ;;  %v487_v19 = vmul.f32 %v473_v34, %v1128_v14 }
  0x23   : > { %v264_v26 = vmul.f32 %v253_v37, %v997_v10  ;;  %v349_v38 = vrot.slane %v208_v57, %v975_v5  ;;  %v1153_v30 = vrot.slane %v208_v57, %v989_v6  ;;  %v399_v24 = vadd.f32 %v391_v53, %v367_v18  ;;  %v1172_v53 = vld [vmem:[%s987_s20 + $0xd8] sm:$0xff]  ;;  %v1175_v18 = vld [vmem:[%s987_s20 + $0xe8] sm:$0xff] }
  0x24   : > { %v494_v0 = vadd.f32 %v486_v59, %v462_v1  ;;  %v296_v36 = vmul.f32 %v285_v63, %v1004_v15  ;;  %v328_v55 = vmul.f32 %v317_v23, %v1007_v16  ;;  %v519_v34 = vmul.f32 %v1040_v35, %v1139_v51  ;;  %v1169_v1 = vld [vmem:[%s987_s20 + $0xc8] sm:$0xff]  ;;  %1548 = vst [vmem:[#allocation26_spill] sm:$0xff] %v1172_v53 }
  0x25   : > { %v551_v14 = vmul.f32 %v537_v39, %v1142_v58  ;;  %v583_v10 = vmul.f32 %v569_v45, %v1145_v33  ;;  %v1166_v62 = vrot.slane %v208_v57, %v991_v7  ;;  %1547 = vst [vmem:[#allocation25_spill] sm:$0xff] %v1169_v1  ;;  %1549 = vst [vmem:[#allocation27_spill] sm:$0xff] %v1175_v18  ;;  %v1185_v58 = vld [vmem:[%s987_s20 + $0xf8] sm:$0xff] }
  0x26   : > { %v526_v59 = vadd.f32 %v518_v60, %v494_v0  ;;  %v431_v16 = vadd.f32 %v423_v56, %v399_v24  ;;  %v304_v15 = vadd.f32 %v296_v36, %v264_v26  ;;  %v360_v35 = vmul.f32 %v349_v38, %v1010_v17  ;;  %1550 = vst [vmem:[#allocation28_spill] sm:$0xff] %v1185_v58 }
  0x27   : > { %v615_v39 = vmul.f32 %v1062_v46, %v1156_v12  ;;  %v392_v45 = vmul.f32 %v1153_v30, %v1018_v22  ;;  %v445_v33 = vrot.slane %v208_v57, %v993_v8  ;;  %v477_v60 = vrot.slane %v208_v57, %v1014_v20 }
  0x28   : > { %v558_v0 = vadd.f32 %v550_v9, %v526_v59  ;;  %v463_v51 = vadd.f32 %v455_v52, %v431_v16  ;;  %v336_v50 = vadd.f32 %v328_v55, %v304_v15  ;;  %v1188_v56 = vrot.slane %v209_v11, %v969_v2 }
  0x29   : > { %v647_v26 = vmul.f32 %v1065_v47, %v1169_v1  ;;  %v679_v46 = vmul.f32 %v1068_v48, %v1172_v53  ;;  %v711_v24 = vmul.f32 %v1083_v54, %v1175_v18  ;;  %v1197_v36 = vrot.slane %v209_v11, %v971_v3 }
  0x2a   : > { %v590_v57 = vadd.f32 %v582_v21, %v558_v0  ;;  %v495_v9 = vadd.f32 %v487_v19, %v463_v51  ;;  %v368_v59 = vadd.f32 %v360_v35, %v336_v50  ;;  %v424_v15 = vmul.f32 %v1166_v62, %v1025_v27 }
  0x2b   : > { %v1203_v16 = vmul.f32 %v1095_v61, %v1185_v58  ;;  %v456_v47 = vmul.f32 %v445_v33, %v1028_v28  ;;  %v488_v48 = vmul.f32 %v477_v60, %v1032_v31  ;;  %v1208_v52 = vrot.slane %v209_v11, %v973_v4 }
  0x2c   : > { %v622_v54 = vadd.f32 %v614_v13, %v590_v57  ;;  %v527_v55 = vadd.f32 %v519_v34, %v495_v9  ;;  %v400_v21 = vadd.f32 %v392_v45, %v368_v59  ;;  %v520_v50 = vmul.f32 %v1188_v56, %v1035_v32 }
  0x2d   : > { %v552_v51 = vmul.f32 %v1197_v36, %v1055_v43  ;;  %v1215_v19 = vrot.slane %v209_v11, %v975_v5  ;;  %v1218_v61 = vrot.slane %v209_v11, %v989_v6  ;;  %v265_v35 = vmul.f32 %v253_v37, %v1046_v40 }
  0x2e   : > { %v654_v0 = vadd.f32 %v1117_v25, %v622_v54  ;;  %v559_v13 = vadd.f32 %v551_v14, %v527_v55  ;;  %v432_v34 = vadd.f32 %v424_v15, %v400_v21  ;;  %v297_v45 = vmul.f32 %v285_v63, %v1049_v41  ;;  %v1551_v63 = vld [vmem:[#allocation11_spill] sm:$0xff] }
  0x2f   : > { %v1224_v57 = vrot.slane %v209_v11, %v991_v7  ;;  %v1227_v9 = vrot.slane %v209_v11, %v993_v8  ;;  %v329_v59 = vmul.f32 %v317_v23, %v1052_v42  ;;  %v361_v43 = vmul.f32 %v349_v38, %v1071_v49  ;;  %v1552_v21 = vld [vmem:[#allocation15_spill] sm:$0xff]  ;;  %v210_v23 = vld [vmem:[%s982_s17 + $0x20] sm:$0xff] }
  0x30   : > { %v686_v37 = vadd.f32 %v1121_v29, %v654_v0  ;;  %v591_v58 = vadd.f32 %v583_v10, %v559_v13  ;;  %v464_v25 = vadd.f32 %v456_v47, %v432_v34  ;;  %v305_v54 = vadd.f32 %v297_v45, %v265_v35  ;;  %v1553_v42 = vld [vmem:[#allocation19_spill] sm:$0xff]  ;;  %v1554_v47 = vld [vmem:[#allocation12_spill] sm:$0xff]  ;;  %v1555_v35 = vld [vmem:[#allocation13_spill] sm:$0xff] }
  0x31   : > { %v584_v14 = vmul.f32 %v1208_v52, %v1058_v44  ;;  %v616_v15 = vmul.f32 %v1215_v19, %v1551_v63  ;;  %v1237_v55 = vrot.slane %v209_v11, %v1014_v20  ;;  %v393_v41 = vmul.f32 %v1153_v30, %v1552_v21  ;;  %v1556_v30 = vld [vmem:[#allocation14_spill] sm:$0xff] }
  0x32   : > { %v718_v38 = vadd.f32 %v1553_v42, %v686_v37  ;;  %v623_v49 = vadd.f32 %v615_v39, %v591_v58  ;;  %v496_v29 = vadd.f32 %v488_v48, %v464_v25  ;;  %v337_v10 = vadd.f32 %v329_v59, %v305_v54  ;;  %v1557_v42 = vld [vmem:[#allocation17_spill] sm:$0xff]  ;;  %v1559_v37 = vld [vmem:[#allocation18_spill] sm:$0xff]  ;;  %v1560_v54 = vld [vmem:[#allocation20_spill] sm:$0xff] }
  0x33   : > { %v648_v11 = vmul.f32 %v1218_v61, %v1554_v47  ;;  %v680_v0 = vmul.f32 %v1224_v57, %v1555_v35  ;;  %v712_v13 = vmul.f32 %v1227_v9, %v1556_v30  ;;  %v425_v58 = vmul.f32 %v1166_v62, %v1557_v42  ;;  %v1558_v39 = vld [vmem:[#allocation21_spill] sm:$0xff] }
  0x34   : > { %v750_v48 = vadd.f32 %v1558_v39, %v718_v38  ;;  %v655_v34 = vadd.f32 %v647_v26, %v623_v49  ;;  %v528_v45 = vadd.f32 %v520_v50, %v496_v29  ;;  %v369_v59 = vadd.f32 %v361_v43, %v337_v10  ;;  %v1561_v38 = vld [vmem:[#allocation2_spill] sm:$0xff]  ;;  %v1562_v26 = vld [vmem:[#allocation3_spill] sm:$0xff]  ;;  %v1563_v39 = vld [vmem:[#allocation4_spill] sm:$0xff] }
  0x35   : > { %v457_v25 = vmul.f32 %v445_v33, %v1559_v37  ;;  %v489_v21 = vmul.f32 %v477_v60, %v1560_v54  ;;  %v257_v47 = vrot.slane %v210_v23, %v969_v2  ;;  %v289_v35 = vrot.slane %v210_v23, %v971_v3  ;;  %v1565_v37 = vld [vmem:[#allocation22_spill] sm:$0xff] }
  0x36   : > { %759 = vst.msk [vmem:[%s1248_s23] sm:$0xff] %vm758_vm0, %v750_v48  ;;  %v687_v30 = vadd.f32 %v679_v46, %v655_v34  ;;  %v560_v63 = vadd.f32 %v552_v51, %v528_v45  ;;  %v401_v44 = vadd.f32 %v393_v41, %v369_v59  ;;  %v321_v62 = vrot.slane %v210_v23, %v973_v4  ;;  %v1564_v46 = vld [vmem:[#allocation16_spill] sm:$0xff]  ;;  %v211_v51 = vld [vmem:[%s982_s17 + $0x28] sm:$0xff] }
  0x37   : > { %v266_v49 = vmul.f32 %v257_v47, %v1561_v38  ;;  %v298_v43 = vmul.f32 %v289_v35, %v1562_v26  ;;  %v353_v33 = vrot.slane %v210_v23, %v975_v5  ;;  %v1270_v60 = vrot.slane %v210_v23, %v989_v6 }
  0x38   : > { %v719_v50 = vadd.f32 %v711_v24, %v687_v30  ;;  %v592_v29 = vadd.f32 %v584_v14, %v560_v63  ;;  %v433_v10 = vadd.f32 %v425_v58, %v401_v44  ;;  %v330_v48 = vmul.f32 %v321_v62, %v1563_v39  ;;  %v1566_v14 = vld [vmem:[#allocation23_spill] sm:$0xff] }
  0x39   : > { %v744_v41 = vmul.f32 %v1237_v55, %v1564_v46  ;;  %v306_v34 = vadd.f32 %v298_v43, %v266_v49  ;;  %v362_v45 = vmul.f32 %v353_v33, %v1010_v17  ;;  %v417_v59 = vrot.slane %v210_v23, %v991_v7 }
  0x3a   : > { %v751_v54 = vadd.f32 %v1203_v16, %v719_v50  ;;  %v624_v26 = vadd.f32 %v616_v15, %v592_v29  ;;  %v465_v38 = vadd.f32 %v457_v25, %v433_v10  ;;  %v521_v24 = vmul.f32 %v1188_v56, %v1565_v37  ;;  %v1567_v56 = vld [vmem:[#allocation24_spill] sm:$0xff] }
  0x3b   : > { %v553_v44 = vmul.f32 %v1197_v36, %v1566_v14  ;;  %v338_v63 = vadd.f32 %v330_v48, %v306_v34  ;;  %v394_v30 = vmul.f32 %v1270_v60, %v1018_v22  ;;  %v449_v58 = vrot.slane %v210_v23, %v993_v8 }
  0x3c   : > { %760 = vst.msk [vmem:[%s1248_s23 + $0x8] sm:$0xff] %vm758_vm0, %v751_v54  ;;  %v656_v49 = vadd.f32 %v648_v11, %v624_v26  ;;  %v497_v43 = vadd.f32 %v489_v21, %v465_v38  ;;  %v1289_v16 = vrot.slane %v210_v23, %v1014_v20  ;;  %v1292_v15 = vrot.slane %v211_v51, %v969_v2 }
  0x3d   : > { %v585_v25 = vmul.f32 %v1208_v52, %v1567_v56  ;;  %v617_v36 = vmul.f32 %v1215_v19, %v1156_v12  ;;  %v370_v50 = vadd.f32 %v362_v45, %v338_v63  ;;  %v426_v29 = vmul.f32 %v417_v59, %v1025_v27 }
  0x3e   : > { %v688_v10 = vadd.f32 %v680_v0, %v656_v49  ;;  %v529_v48 = vadd.f32 %v521_v24, %v497_v43  ;;  %v649_v21 = vmul.f32 %v1218_v61, %v1169_v1  ;;  %v681_v23 = vmul.f32 %v1224_v57, %v1172_v53  ;;  %v1569_v43 = vld [vmem:[#allocation6_spill] sm:$0xff] }
  0x3f   : > { %v713_v11 = vmul.f32 %v1227_v9, %v1175_v18  ;;  %v402_v54 = vadd.f32 %v394_v30, %v370_v50  ;;  %v458_v52 = vmul.f32 %v449_v58, %v1028_v28  ;;  %v1307_v38 = vrot.slane %v211_v51, %v971_v3  ;;  %v1579_v1 = vld [vmem:[#allocation14_spill] sm:$0xff] }
  0x40   : > { %v720_v19 = vadd.f32 %v712_v13, %v688_v10  ;;  %v561_v26 = vadd.f32 %v553_v44, %v529_v48  ;;  %v490_v0 = vmul.f32 %v1289_v16, %v1032_v31  ;;  %v522_v61 = vmul.f32 %v1292_v15, %v1035_v32 }
  0x41   : > { %v434_v34 = vadd.f32 %v426_v29, %v402_v54  ;;  %v1314_v57 = vrot.slane %v211_v51, %v973_v4  ;;  %v1317_v9 = vrot.slane %v211_v51, %v975_v5  ;;  %v1320_v45 = vrot.slane %v211_v51, %v989_v6  ;;  %v1570_v29 = vld [vmem:[#allocation7_spill] sm:$0xff]  ;;  %v1571_v54 = vld [vmem:[#allocation28_spill] sm:$0xff] }
  0x42   : > { %v752_v24 = vadd.f32 %v744_v41, %v720_v19  ;;  %v593_v13 = vadd.f32 %v585_v25, %v561_v26  ;;  %v1323_v44 = vrot.slane %v211_v51, %v991_v7  ;;  %v267_v63 = vmul.f32 %v257_v47, %v1046_v40  ;;  %v1572_v25 = vld [vmem:[#allocation8_spill] sm:$0xff] }
  0x43   : > { %v466_v30 = vadd.f32 %v458_v52, %v434_v34  ;;  %v1327_v49 = vrot.slane %v211_v51, %v993_v8  ;;  %v299_v50 = vmul.f32 %v289_v35, %v1569_v43  ;;  %v331_v10 = vmul.f32 %v321_v62, %v1570_v29  ;;  %v1574_v52 = vld [vmem:[#allocation9_spill] sm:$0xff]  ;;  %v1575_v35 = vld [vmem:[#allocation10_spill] sm:$0xff]  ;;  %v212_v62 = vld [vmem:[%s982_s17 + $0x30] sm:$0xff] }
  0x44   : > { %761 = vst.msk [vmem:[%s1248_s23 + $0x10] sm:$0xff] %vm758_vm0, %v752_v24  ;;  %v625_v48 = vadd.f32 %v617_v36, %v593_v13  ;;  %v745_v41 = vmul.f32 %v1237_v55, %v1571_v54  ;;  %v554_v19 = vmul.f32 %v1307_v38, %v1572_v25  ;;  %v1338_v26 = vrot.slane %v211_v51, %v1014_v20  ;;  %v1576_v24 = vld [vmem:[#allocation11_spill] sm:$0xff]  ;;  %v1577_v13 = vld [vmem:[#allocation12_spill] sm:$0xff]  ;;  %v1578_v54 = vld [vmem:[#allocation13_spill] sm:$0xff] }
  0x45   : > { %1568 = vst [vmem:[#allocation19_spill] sm:$0xff] %v1327_v49  ;;  %v498_v47 = vadd.f32 %v490_v0, %v466_v30  ;;  %v586_v34 = vmul.f32 %v1314_v57, %v1574_v52  ;;  %v307_v18 = vadd.f32 %v299_v50, %v267_v63  ;;  %v363_v53 = vmul.f32 %v353_v33, %v1575_v35  ;;  %v1580_v52 = vld [vmem:[#allocation15_spill] sm:$0xff] }
  0x46   : > { %1573 = vst [vmem:[#allocation21_spill] sm:$0xff] %v1338_v26  ;;  %v657_v32 = vadd.f32 %v649_v21, %v625_v48  ;;  %v618_v36 = vmul.f32 %v1317_v9, %v1576_v24  ;;  %v650_v55 = vmul.f32 %v1320_v45, %v1577_v13  ;;  %v682_v25 = vmul.f32 %v1323_v44, %v1578_v54  ;;  %v1581_v48 = vld [vmem:[#allocation18_spill] sm:$0xff] }
  0x47   : > { %v530_v51 = vadd.f32 %v522_v61, %v498_v47  ;;  %v714_v0 = vmul.f32 %v1327_v49, %v1579_v1  ;;  %v339_v30 = vadd.f32 %v331_v10, %v307_v18  ;;  %v395_v33 = vmul.f32 %v1270_v60, %v1580_v52 }
  0x48   : > { %v689_v63 = vadd.f32 %v681_v23, %v657_v32  ;;  %v746_v21 = vmul.f32 %v1338_v26, %v1564_v46  ;;  %v427_v50 = vmul.f32 %v417_v59, %v1557_v42  ;;  %v459_v13 = vmul.f32 %v449_v58, %v1581_v48  ;;  %v213_v46 = vld [vmem:[%s982_s17 + $0x38] sm:$0xff]  ;;  %v1582_v59 = vld [vmem:[#allocation2_spill] sm:$0xff]  ;;  %v1583_v58 = vld [vmem:[#allocation3_spill] sm:$0xff] }
  0x49   : > { %v562_v24 = vadd.f32 %v554_v19, %v530_v51  ;;  %v371_v35 = vadd.f32 %v363_v53, %v339_v30  ;;  %v261_v61 = vrot.slane %v212_v62, %v969_v2  ;;  %v293_v47 = vrot.slane %v212_v62, %v971_v3  ;;  %v1584_v51 = vld [vmem:[#allocation20_spill] sm:$0xff] }
  0x4a   : > { %v721_v1 = vadd.f32 %v713_v11, %v689_v63  ;;  %v325_v18 = vrot.slane %v212_v62, %v973_v4  ;;  %v357_v60 = vrot.slane %v212_v62, %v975_v5  ;;  %v389_v32 = vrot.slane %v212_v62, %v989_v6 }
  0x4b   : > { %v594_v23 = vadd.f32 %v586_v34, %v562_v24  ;;  %v403_v10 = vadd.f32 %v395_v33, %v371_v35  ;;  %v268_v54 = vmul.f32 %v261_v61, %v1582_v59  ;;  %v300_v19 = vmul.f32 %v293_v47, %v1583_v58  ;;  %v1586_v58 = vld [vmem:[#allocation5_spill] sm:$0xff] }
  0x4c   : > { %v753_v53 = vadd.f32 %v745_v41, %v721_v1  ;;  %v491_v30 = vmul.f32 %v1289_v16, %v1584_v51  ;;  %v332_v11 = vmul.f32 %v325_v18, %v1563_v39  ;;  %v364_v63 = vmul.f32 %v357_v60, %v1010_v17 }
  0x4d   : > { %v626_v48 = vadd.f32 %v618_v36, %v594_v23  ;;  %v435_v26 = vadd.f32 %v427_v50, %v403_v10  ;;  %v308_v42 = vadd.f32 %v300_v19, %v268_v54  ;;  %v421_v49 = vrot.slane %v212_v62, %v991_v7  ;;  %v1587_v19 = vld [vmem:[#allocation10_spill] sm:$0xff] }
  0x4e   : > { %762 = vst.msk [vmem:[%s1248_s23 + $0x18] sm:$0xff] %vm758_vm0, %v753_v53  ;;  %v523_v34 = vmul.f32 %v1292_v15, %v1565_v37  ;;  %v396_v35 = vmul.f32 %v389_v32, %v1018_v22  ;;  %v1377_v1 = vrot.slane %v213_v46, %v969_v2  ;;  %v1380_v16 = vrot.slane %v213_v46, %v971_v3 }
  0x4f   : > { %v658_v39 = vadd.f32 %v650_v55, %v626_v48  ;;  %v467_v17 = vadd.f32 %v459_v13, %v435_v26  ;;  %v340_v41 = vadd.f32 %v332_v11, %v308_v42  ;;  %v453_v54 = vrot.slane %v212_v62, %v993_v8  ;;  %v1591_v11 = vld [vmem:[#allocation19_spill] sm:$0xff] }
  0x50   : > { %v555_v24 = vmul.f32 %v1307_v38, %v1566_v14  ;;  %v587_v36 = vmul.f32 %v1314_v57, %v1567_v56  ;;  %v428_v15 = vmul.f32 %v421_v49, %v1025_v27  ;;  %v485_v22 = vrot.slane %v212_v62, %v1014_v20 }
  0x51   : > { %v690_v2 = vadd.f32 %v682_v25, %v658_v39  ;;  %v499_v33 = vadd.f32 %v491_v30, %v467_v17  ;;  %v372_v50 = vadd.f32 %v364_v63, %v340_v41  ;;  %v581_v3 = vrot.slane %v213_v46, %v973_v4 }
  0x52   : > { %v1391_v26 = vrot.slane %v213_v46, %v975_v5  ;;  %v1394_v42 = vrot.slane %v213_v46, %v989_v6  ;;  %v1397_v38 = vrot.slane %v213_v46, %v991_v7  ;;  %v1400_v57 = vrot.slane %v213_v46, %v993_v8 }
  0x53   : > { %v722_v27 = vadd.f32 %v714_v0, %v690_v2  ;;  %v531_v62 = vadd.f32 %v523_v34, %v499_v33  ;;  %v404_v25 = vadd.f32 %v396_v35, %v372_v50  ;;  %v460_v13 = vmul.f32 %v453_v54, %v1028_v28  ;;  %v1585_v28 = vld [vmem:[#allocation25_spill] sm:$0xff]  ;;  %v1596_v33 = vld [vmem:[#allocation11_spill] sm:$0xff] }
  0x54   : > { %v619_v4 = vmul.f32 %v1317_v9, %v1156_v12  ;;  %v492_v5 = vmul.f32 %v485_v22, %v1032_v31  ;;  %v741_v23 = vrot.slane %v213_v46, %v1014_v20  ;;  %v269_v7 = vmul.f32 %v261_v61, %v1046_v40  ;;  %v1588_v46 = vld [vmem:[#allocation26_spill] sm:$0xff]  ;;  %v1589_v61 = vld [vmem:[#allocation8_spill] sm:$0xff]  ;;  %v1592_v35 = vld [vmem:[#allocation9_spill] sm:$0xff] }
  0x55   : > { %v754_v55 = vadd.f32 %v746_v21, %v722_v27  ;;  %v563_v6 = vadd.f32 %v555_v24, %v531_v62  ;;  %v436_v48 = vadd.f32 %v428_v15, %v404_v25  ;;  %v301_v8 = vmul.f32 %v293_v47, %v1569_v43 }
  0x56   : > { %v333_v0 = vmul.f32 %v325_v18, %v1570_v29  ;;  %v651_v59 = vmul.f32 %v1320_v45, %v1585_v28  ;;  %v524_v31 = vmul.f32 %v1377_v1, %v1586_v58  ;;  %v365_v53 = vmul.f32 %v357_v60, %v1587_v19  ;;  %v1590_v45 = vld [vmem:[#allocation27_spill] sm:$0xff]  ;;  %v1593_v60 = vld [vmem:[#allocation17_spill] sm:$0xff]  ;;  %v1601_v58 = vld [vmem:[#allocation16_spill] sm:$0xff] }
  0x57   : > { %763 = vst.msk [vmem:[%s1248_s23 + $0x20] sm:$0xff] %vm758_vm0, %v754_v55  ;;  %v595_v10 = vadd.f32 %v587_v36, %v563_v6  ;;  %v468_v9 = vadd.f32 %v460_v13, %v436_v48  ;;  %v309_v21 = vadd.f32 %v301_v8, %v269_v7  ;;  %v683_v40 = vmul.f32 %v1323_v44, %v1588_v46  ;;  %v1594_v36 = vld [vmem:[#allocation28_spill] sm:$0xff]  ;;  %v1595_v44 = vld [vmem:[#allocation21_spill] sm:$0xff] }
  0x58   : > { %v556_v29 = vmul.f32 %v1380_v16, %v1589_v61  ;;  %v397_v18 = vmul.f32 %v389_v32, %v1580_v52  ;;  %v715_v63 = vmul.f32 %v1591_v11, %v1590_v45  ;;  %v588_v39 = vmul.f32 %v581_v3, %v1592_v35  ;;  %v1597_v32 = vld [vmem:[#allocation18_spill] sm:$0xff]  ;;  %v1598_v13 = vld [vmem:[#allocation12_spill] sm:$0xff]  ;;  %v1599_v48 = vld [vmem:[#allocation13_spill] sm:$0xff] }
  0x59   : > { %v627_v20 = vadd.f32 %v619_v4, %v595_v10  ;;  %v500_v43 = vadd.f32 %v492_v5, %v468_v9  ;;  %v341_v47 = vadd.f32 %v333_v0, %v309_v21  ;;  %v429_v41 = vmul.f32 %v421_v49, %v1593_v60  ;;  %v1600_v10 = vld [vmem:[#allocation14_spill] sm:$0xff] }
  0x5a   : > { %v747_v15 = vmul.f32 %v1595_v44, %v1594_v36  ;;  %v620_v50 = vmul.f32 %v1391_v26, %v1596_v33  ;;  %v461_v27 = vmul.f32 %v453_v54, %v1597_v32  ;;  %v652_v4 = vmul.f32 %v1394_v42, %v1598_v13 }
  0x5b   : > { %v659_v30 = vadd.f32 %v651_v59, %v627_v20  ;;  %v532_v34 = vadd.f32 %v524_v31, %v500_v43  ;;  %v373_v17 = vadd.f32 %v365_v53, %v341_v47  ;;  %v493_v49 = vmul.f32 %v485_v22, %v1584_v51 }
  0x5c   : > { %v684_v7 = vmul.f32 %v1397_v38, %v1599_v48  ;;  %v525_v0 = vmul.f32 %v1377_v1, %v1565_v37  ;;  %v716_v59 = vmul.f32 %v1400_v57, %v1600_v10  ;;  %v557_v51 = vmul.f32 %v1380_v16, %v1566_v14 }
  0x5d   : > { %v691_v24 = vadd.f32 %v683_v40, %v659_v30  ;;  %v564_v2 = vadd.f32 %v556_v29, %v532_v34  ;;  %v405_v52 = vadd.f32 %v397_v18, %v373_v17  ;;  %v748_v31 = vmul.f32 %v741_v23, %v1601_v58 }
  0x5e   : > { %v589_v19 = vmul.f32 %v581_v3, %v1567_v56  ;;  %v621_v1 = vmul.f32 %v1391_v26, %v1156_v12  ;;  %v653_v43 = vmul.f32 %v1394_v42, %v1585_v28  ;;  %v685_v16 = vmul.f32 %v1397_v38, %v1588_v46 }
  0x5f   : > { %v723_v62 = vadd.f32 %v715_v63, %v691_v24  ;;  %v596_v25 = vadd.f32 %v588_v39, %v564_v2  ;;  %v437_v5 = vadd.f32 %v429_v41, %v405_v52  ;;  %v717_v56 = vmul.f32 %v1400_v57, %v1590_v45 }
  0x60   : > { %v749_v29 = vmul.f32 %v741_v23, %v1594_v36 }
  0x61   : > { %v755_v55 = vadd.f32 %v747_v15, %v723_v62  ;;  %v628_v6 = vadd.f32 %v620_v50, %v596_v25  ;;  %v469_v8 = vadd.f32 %v461_v27, %v437_v5 }
  0x63   : > { %764 = vst.msk [vmem:[%s1248_s23 + $0x28] sm:$0xff] %vm758_vm0, %v755_v55  ;;  %v660_v54 = vadd.f32 %v652_v4, %v628_v6  ;;  %v501_v9 = vadd.f32 %v493_v49, %v469_v8 }
  0x65   : > { %v692_v22 = vadd.f32 %v684_v7, %v660_v54  ;;  %v533_v21 = vadd.f32 %v525_v0, %v501_v9 }
  0x67   : > { %v724_v53 = vadd.f32 %v716_v59, %v692_v22  ;;  %v565_v37 = vadd.f32 %v557_v51, %v533_v21 }
  0x69   : > { %v756_v20 = vadd.f32 %v748_v31, %v724_v53  ;;  %v597_v40 = vadd.f32 %v589_v19, %v565_v37 }
  0x6b   : > { %765 = vst.msk [vmem:[%s1248_s23 + $0x30] sm:$0xff] %vm758_vm0, %v756_v20  ;;  %v629_v14 = vadd.f32 %v621_v1, %v597_v40 }
  0x6d   : > { %v661_v61 = vadd.f32 %v653_v43, %v629_v14 }
  0x6f   : > { %v693_v3 = vadd.f32 %v685_v16, %v661_v61 }
  0x71   : > { %v725_v47 = vadd.f32 %v717_v56, %v693_v3 }
  0x73   : > { %v757_v12 = vadd.f32 %v749_v29, %v725_v47 }
  0x75   : > { %766 = vst.msk [vmem:[%s1248_s23 + $0x38] sm:$0xff] %vm758_vm0, %v757_v12 }
  0x76 PF: > { %s12_s11 = sadd.s32 1, %s930_s11   ;;  %s1602_s9 = smov %s926_s10 }
  0x77   : > { %p9_p5 = scmp.ge.s32.totalorder %s12_s11, 4   ;;  %s1603_s10 = smov %s1605_s12 }
  0x79   :  { %11 = sbr.rel (!%p9_p5) target bundleno = 2 (0x2), region = 61 }

</bundles_post_ra>
